<compile_context>
chip_gen: v7x
topology: tpu7x:2x2x1
jax: 0.10.0
libtpu: 0.0.40
codegen_flags: <defaults>
</compile_context>

<pallas_src>
import functools

import jax
import jax.numpy as jnp
from jax.experimental import pallas as pl
from jax.experimental.pallas import tpu as pltpu

_LANE = 128                              # lane width / MXU feature alignment
_TILE_BUDGET_BYTES = 36 * 1024 * 1024    # conservative, fits v7x's 64 MiB VMEM
_VMEM_FLOOR = 32 * 1024 * 1024
_VMEM_CAP = 64 * 1024 * 1024


def _round_up(x, n):
    return ((x + n - 1) // n) * n


def _sublane(dtype):
    """Minimum sublane multiple for dense packing of this dtype."""
    return {4: 8, 2: 16, 1: 32}.get(jnp.dtype(dtype).itemsize, 8)


def _pad2d(a, rows, cols):
    """Zero-pad a 2-D array up to (rows, cols); no-op if already that shape."""
    pr, pc = rows - a.shape[0], cols - a.shape[1]
    if pr == 0 and pc == 0:
        return a
    return jnp.pad(a, ((0, pr), (0, pc)))


def _ffn_kernel(x_ref, w1_ref, b1_ref, w2_ref, b2_ref, o_ref):
    # x_ref : (TM, D_in)   VMEM, streamed per grid step
    # w1_ref: (D_in, H)    VMEM, resident (constant index_map)
    # b1_ref: (1, H)       VMEM, resident
    # w2_ref: (H, D_out)   VMEM, resident
    # b2_ref: (1, D_out)   VMEM, resident
    # o_ref : (TM, D_out)  VMEM, streamed per grid step
    x = x_ref[...]
    h = jnp.dot(x, w1_ref[...], preferred_element_type=jnp.float32)   # MXU, f32 acc
    h = jnp.maximum(h + b1_ref[...], 0.0)                             # bias + ReLU (VPU, f32)
    # Cast hidden activations to the weight dtype so bf16 weights hit the bf16 MXU.
    y = jnp.dot(h.astype(w2_ref.dtype), w2_ref[...],
                preferred_element_type=jnp.float32)
    o_ref[...] = (y + b2_ref[...]).astype(o_ref.dtype)                # lane-dense store


def _choose_tile_m(m_pad, d_in, hidden, d_out, itemsize, sublane, budget):
    """Largest row tile (>= sublane) whose VMEM footprint fits the budget."""
    resident = itemsize * (d_in * hidden + hidden * d_out + hidden + d_out)
    for tm in (2048, 1024, 512, 256, 128, 64, 32, 16, 8):
        if tm < sublane or tm > m_pad:
            continue
        io = 2 * itemsize * tm * (d_in + d_out)     # double-buffered X / Y tiles
        interm = 4 * tm * (hidden + d_out)          # f32 hidden + f32 out intermediates
        if resident + io + interm <= budget:
            return tm
    return min(m_pad, max(sublane, 8))


@functools.partial(jax.jit, static_argnames=("tile_m",))
def position_wise_ffn(x, w1, b1, w2, b2, *, tile_m=None):
    """relu(x @ w1 + b1) @ w2 + b2 over the last axis of x.

    x : (..., num_input)
    w1: (num_input, num_hiddens)   (transposed vs. torch's (out, in) layout)
    b1: (num_hiddens,)
    w2: (num_hiddens, num_outputs)
    b2: (num_outputs,)
    tile_m: optional row-tile override (rounded up to the sublane multiple).
    """
    *lead, d_in = x.shape
    hidden = w1.shape[1]
    d_out = w2.shape[1]
    m = 1
    for s in lead:
        m *= s

    itemsize = jnp.dtype(x.dtype).itemsize
    sublane = _sublane(x.dtype)

    # Lane-align feature dims (exact: zero padding contributes nothing).
    d_in_p = _round_up(d_in, _LANE)
    hid_p = _round_up(hidden, _LANE)
    d_out_p = _round_up(d_out, _LANE)

    m_pad = _round_up(m, sublane)
    if tile_m is None:
        tm = _choose_tile_m(m_pad, d_in_p, hid_p, d_out_p, itemsize, sublane,
                            _TILE_BUDGET_BYTES)
    else:
        tm = min(_round_up(int(tile_m), sublane), m_pad)
    m_grid = _round_up(m_pad, tm)
    num_tiles = m_grid // tm

    x2d = _pad2d(x.reshape(m, d_in), m_grid, d_in_p)
    w1p = _pad2d(w1, d_in_p, hid_p)
    b1p = _pad2d(b1.reshape(1, hidden), 1, hid_p)
    w2p = _pad2d(w2, hid_p, d_out_p)
    b2p = _pad2d(b2.reshape(1, d_out), 1, d_out_p)

    # VMEM limit from the same budget arithmetic (capped at v7x-safe 64 MiB).
    w_itemsize = jnp.dtype(w1.dtype).itemsize
    resident = w_itemsize * (d_in_p * hid_p + hid_p * d_out_p + hid_p + d_out_p)
    per_step = 2 * itemsize * tm * (d_in_p + d_out_p) + 4 * tm * (hid_p + d_out_p)
    vmem_limit = min(max(int(1.5 * (resident + per_step)), _VMEM_FLOOR), _VMEM_CAP)

    flops = 2 * m_grid * (d_in_p * hid_p + hid_p * d_out_p)
    bytes_accessed = (
        x2d.size * itemsize
        + (w1p.size + w2p.size + b1p.size + b2p.size) * w_itemsize
        + m_grid * d_out_p * itemsize)
    cost = pl.CostEstimate(flops=flops, transcendentals=0,
                           bytes_accessed=bytes_accessed)

    out2d = pl.pallas_call(
        _ffn_kernel,
        out_shape=jax.ShapeDtypeStruct((m_grid, d_out_p), x.dtype),
        grid_spec=pltpu.PrefetchScalarGridSpec(
            num_scalar_prefetch=0,
            grid=(num_tiles,),
            in_specs=[
                pl.BlockSpec((tm, d_in_p), lambda i: (i, 0)),      # streamed X rows
                pl.BlockSpec((d_in_p, hid_p), lambda i: (0, 0)),   # resident W1
                pl.BlockSpec((1, hid_p), lambda i: (0, 0)),        # resident b1
                pl.BlockSpec((hid_p, d_out_p), lambda i: (0, 0)),  # resident W2
                pl.BlockSpec((1, d_out_p), lambda i: (0, 0)),      # resident b2
            ],
            out_specs=pl.BlockSpec((tm, d_out_p), lambda i: (i, 0)),
        ),
        compiler_params=pltpu.CompilerParams(
            dimension_semantics=("parallel",),   # independent row tiles -> TC sharding
            vmem_limit_bytes=vmem_limit,
        ),
        cost_estimate=cost,
    )(x2d, w1p, b1p, w2p, b2p)

    return out2d[:m, :d_out].reshape(*lead, d_out)


def _init_linear(key, fan_in, fan_out, dtype=jnp.float32):
    """PyTorch-style uniform(-1/sqrt(fan_in), 1/sqrt(fan_in)).

    Weight returned already transposed to (fan_in, fan_out) for row-major matmul.
    """
    kw, kb = jax.random.split(key)
    bound = 1.0 / jnp.sqrt(jnp.float32(fan_in))
    w = jax.random.uniform(kw, (fan_in, fan_out), dtype, -bound, bound)
    b = jax.random.uniform(kb, (fan_out,), dtype, -bound, bound)
    return w, b


if __name__ == "__main__":
    # Module-implied shapes: X is (batch, seq, num_input); Linear acts on last dim.
    batch, seq = 2, 8
    num_input, num_hiddens, num_outputs = 32, 64, 32

    key = jax.random.PRNGKey(0)
    kx, k1, k2 = jax.random.split(key, 3)

    x = jax.random.normal(kx, (batch, seq, num_input), jnp.float32)
    w1, b1 = _init_linear(k1, num_input, num_hiddens)
    w2, b2 = _init_linear(k2, num_hiddens, num_outputs)

    ref = jnp.maximum(x @ w1 + b1, 0.0) @ w2 + b2

    # f32 path, single tile: exact vs plain-JAX reference.
    out = jax.block_until_ready(position_wise_ffn(x, w1, b1, w2, b2))
    assert out.shape == (batch, seq, num_outputs)
    assert jnp.allclose(out, ref, atol=1e-5, rtol=1e-5)

    # f32 path with a forced small row tile -> exercises the multi-step grid
    # (accumulator-free row streaming) on the same small input.
    out_tiled = jax.block_until_ready(
        position_wise_ffn(x, w1, b1, w2, b2, tile_m=8))
    assert jnp.allclose(out_tiled, ref, atol=1e-5, rtol=1e-5)

    # bf16 path: bf16 operands feed the MXU at bf16 rate, accumulation stays f32.
    out_bf16 = jax.block_until_ready(position_wise_ffn(
        x.astype(jnp.bfloat16), w1.astype(jnp.bfloat16), b1.astype(jnp.bfloat16),
        w2.astype(jnp.bfloat16), b2.astype(jnp.bfloat16)))
    assert jnp.allclose(out_bf16.astype(jnp.float32), ref, atol=1e-1, rtol=1e-1)

    print("KERNEL_OK")
</pallas_src>

<mosaic_0001>
module attributes {stable_mosaic.version = 11 : i64} {
  func.func @_ffn_kernel(%arg0: i32, %arg1: memref<16x128xf32, #tpu.memory_space<vmem>>, %arg2: memref<128x128xf32, #tpu.memory_space<vmem>>, %arg3: memref<1x128xf32, #tpu.memory_space<vmem>>, %arg4: memref<128x128xf32, #tpu.memory_space<vmem>>, %arg5: memref<1x128xf32, #tpu.memory_space<vmem>>, %arg6: memref<16x128xf32, #tpu.memory_space<vmem>>) attributes {dimension_semantics = [#tpu.dimension_semantics<parallel>], iteration_bounds = array<i64: 1>, scalar_prefetch = 0 : i64, scratch_operands = 0 : i64, tpu.core_type = #tpu.core_type<tc>, window_params = [{transform_indices = @transform_0, window_bounds = array<i64: 16, 128>}, {pipeline_mode = #tpu.pipeline_mode<synchronous>, transform_indices = @transform_1, window_bounds = array<i64: 128, 128>}, {pipeline_mode = #tpu.pipeline_mode<synchronous>, transform_indices = @transform_2, window_bounds = array<i64: 1, 128>}, {pipeline_mode = #tpu.pipeline_mode<synchronous>, transform_indices = @transform_3, window_bounds = array<i64: 128, 128>}, {pipeline_mode = #tpu.pipeline_mode<synchronous>, transform_indices = @transform_4, window_bounds = array<i64: 1, 128>}, {transform_indices = @transform_5, window_bounds = array<i64: 16, 128>}]} {
    %c0 = arith.constant 0 : index
    %c0_0 = arith.constant 0 : index
    %0 = vector.load %arg1[%c0, %c0_0] : memref<16x128xf32, #tpu.memory_space<vmem>>, vector<16x128xf32>
    %c0_1 = arith.constant 0 : index
    %c0_2 = arith.constant 0 : index
    %1 = vector.load %arg2[%c0_1, %c0_2] : memref<128x128xf32, #tpu.memory_space<vmem>>, vector<128x128xf32>
    %cst = arith.constant dense<0.000000e+00> : vector<16x128xf32>
    %2 = tpu.matmul %0, %1, %cst {dimension_numbers = #tpu.dot_dimension_numbers<[1], [0], [0], [1], [0, 0, 1, 1], [], []>} : vector<16x128xf32>, vector<128x128xf32>, vector<16x128xf32> -> vector<16x128xf32>
    %c0_3 = arith.constant 0 : index
    %c0_4 = arith.constant 0 : index
    %3 = vector.load %arg3[%c0_3, %c0_4] : memref<1x128xf32, #tpu.memory_space<vmem>>, vector<1x128xf32>
    %4 = vector.broadcast %3 : vector<1x128xf32> to vector<16x128xf32>
    %5 = arith.addf %2, %4 : vector<16x128xf32>
    %cst_5 = arith.constant 0.000000e+00 : f32
    %6 = vector.broadcast %cst_5 : f32 to vector<16x128xf32>
    %7 = arith.maximumf %5, %6 : vector<16x128xf32>
    %c0_6 = arith.constant 0 : index
    %c0_7 = arith.constant 0 : index
    %8 = vector.load %arg4[%c0_6, %c0_7] : memref<128x128xf32, #tpu.memory_space<vmem>>, vector<128x128xf32>
    %cst_8 = arith.constant dense<0.000000e+00> : vector<16x128xf32>
    %9 = tpu.matmul %7, %8, %cst_8 {dimension_numbers = #tpu.dot_dimension_numbers<[1], [0], [0], [1], [0, 0, 1, 1], [], []>} : vector<16x128xf32>, vector<128x128xf32>, vector<16x128xf32> -> vector<16x128xf32>
    %c0_9 = arith.constant 0 : index
    %c0_10 = arith.constant 0 : index
    %10 = vector.load %arg5[%c0_9, %c0_10] : memref<1x128xf32, #tpu.memory_space<vmem>>, vector<1x128xf32>
    %11 = vector.broadcast %10 : vector<1x128xf32> to vector<16x128xf32>
    %12 = arith.addf %9, %11 : vector<16x128xf32>
    %c0_11 = arith.constant 0 : index
    %c0_12 = arith.constant 0 : index
    %13 = vector.load %arg6[%c0_11, %c0_12] : memref<16x128xf32, #tpu.memory_space<vmem>>, vector<16x128xf32>
    tpu.vector_store %arg6[%c0_11, %c0_12], %12 {strides = array<i32>} : memref<16x128xf32, #tpu.memory_space<vmem>>, vector<16x128xf32>,
    return
  }
  func.func @transform_0(%arg0: i32) -> (i32, i32) {
    %c0_i32 = arith.constant 0 : i32
    %c0_i32_0 = arith.constant 0 : i32
    return %arg0, %c0_i32 : i32, i32
  }
  func.func @transform_1(%arg0: i32) -> (i32, i32) {
    %c0_i32 = arith.constant 0 : i32
    %c0_i32_0 = arith.constant 0 : i32
    %c0_i32_1 = arith.constant 0 : i32
    return %c0_i32, %c0_i32_0 : i32, i32
  }
  func.func @transform_2(%arg0: i32) -> (i32, i32) {
    %c0_i32 = arith.constant 0 : i32
    %c0_i32_0 = arith.constant 0 : i32
    %c0_i32_1 = arith.constant 0 : i32
    return %c0_i32, %c0_i32_0 : i32, i32
  }
  func.func @transform_3(%arg0: i32) -> (i32, i32) {
    %c0_i32 = arith.constant 0 : i32
    %c0_i32_0 = arith.constant 0 : i32
    %c0_i32_1 = arith.constant 0 : i32
    return %c0_i32, %c0_i32_0 : i32, i32
  }
  func.func @transform_4(%arg0: i32) -> (i32, i32) {
    %c0_i32 = arith.constant 0 : i32
    %c0_i32_0 = arith.constant 0 : i32
    %c0_i32_1 = arith.constant 0 : i32
    return %c0_i32, %c0_i32_0 : i32, i32
  }
  func.func @transform_5(%arg0: i32) -> (i32, i32) {
    %c0_i32 = arith.constant 0 : i32
    %c0_i32_0 = arith.constant 0 : i32
    return %arg0, %c0_i32 : i32, i32
  }
}

</mosaic_0001>

<bundles_post_ra>
// kernel: position_wise_ffn.1
= control target key start
LH: loop header
LB: loop body
LE: loop exit
PB: predicated region body
PF: predicated region fallthrough
CT: control target
= control target key end

     0   :  { %s542_s1 = inlined_call_operand.vmem [shape: f32[128,128], index: 1, kind: input, shape index: {}]   ;;  %s543_s0 = inlined_call_operand.vmem [shape: f32[16,128], index: 0, kind: input, shape index: {}]   ;;  %s544_s3 = inlined_call_operand.vmem [shape: f32[128,128], index: 3, kind: input, shape index: {}]   ;;  %s545_s2 = inlined_call_operand.vmem [shape: f32[1,128], index: 2, kind: input, shape index: {}]   ;;  %s546_s4 = inlined_call_operand.vmem [shape: f32[1,128], index: 4, kind: input, shape index: {}]   ;;  %s547_s5 = inlined_call_operand.vmem [shape: f32[16,128], index: 5, kind: output, shape index: {}]  }
   0x1   :  { %v22_v0 = vld [vmem:[%s542_s1] sm:$0xff]  ;;  %v23_v1 = vld [vmem:[%s542_s1 + $0x8] sm:$0xff]  ;;  %v24_v2 = vld [vmem:[%s542_s1 + $0x10] sm:$0xff] }
   0x2   :  { %v334_v3 = vpack.c.bf16 %v23_v1, %v22_v0  ;;  %v25_v4 = vld [vmem:[%s542_s1 + $0x18] sm:$0xff]  ;;  %v26_v6 = vld [vmem:[%s542_s1 + $0x20] sm:$0xff]  ;;  %v27_v7 = vld [vmem:[%s542_s1 + $0x28] sm:$0xff] }
   0x3   :  { %v338_v5 = vpack.c.bf16 %v25_v4, %v24_v2  ;;  %v342_v8 = vpack.c.bf16 %v27_v7, %v26_v6  ;;  %v28_v9 = vld [vmem:[%s542_s1 + $0x30] sm:$0xff]  ;;  %v29_v10 = vld [vmem:[%s542_s1 + $0x38] sm:$0xff]  ;;  %v20_v11 = vld [vmem:[%s543_s0] sm:$0xff] }
   0x4   :  { %335 = vmatprep.subr.bf16.mxu0 %v334_v3  ;;  %296 = vmatprep.mubr.f32.mxu0 %v20_v11  ;;  %v122_v12 = vld [vmem:[%s544_s3] sm:$0xff]  ;;  %v123_v13 = vld [vmem:[%s544_s3 + $0x8] sm:$0xff]  ;;  %v124_v14 = vld [vmem:[%s544_s3 + $0x10] sm:$0xff]  ;;  %v346_v20 = vpack.c.bf16 %v29_v10, %v28_v9 }
   0x5   :  { %337 = vmatpush3.bf16.msra.mxu0 %v334_v3  ;;  %v366_v15 = vpack.c.bf16 %v123_v13, %v122_v12  ;;  %v125_v16 = vld [vmem:[%s544_s3 + $0x18] sm:$0xff]  ;;  %v126_v18 = vld [vmem:[%s544_s3 + $0x20] sm:$0xff]  ;;  %v127_v19 = vld [vmem:[%s544_s3 + $0x28] sm:$0xff] }
   0x6   :  { %339 = vmatprep.subr.bf16.mxu0 %v338_v5  ;;  %v370_v17 = vpack.c.bf16 %v125_v16, %v124_v14  ;;  %v30_v21 = vld [vmem:[%s542_s1 + $0x40] sm:$0xff]  ;;  %v31_v22 = vld [vmem:[%s542_s1 + $0x48] sm:$0xff]  ;;  %v374_v23 = vpack.c.bf16 %v127_v19, %v126_v18  ;;  %v128_v24 = vld [vmem:[%s544_s3 + $0x30] sm:$0xff] }
   0x7   :  { %367 = vmatprep.subr.bf16.mxu1 %v366_v15  ;;  %v129_v25 = vld [vmem:[%s544_s3 + $0x38] sm:$0xff]  ;;  %v350_v26 = vpack.c.bf16 %v31_v22, %v30_v21  ;;  %v32_v27 = vld [vmem:[%s542_s1 + $0x50] sm:$0xff]  ;;  %v130_v30 = vld [vmem:[%s544_s3 + $0x40] sm:$0xff] }
   0x8   :  { %369 = vmatpush3.bf16.msra.mxu1 %v366_v15  ;;  %v33_v28 = vld [vmem:[%s542_s1 + $0x58] sm:$0xff]  ;;  %v378_v29 = vpack.c.bf16 %v129_v25, %v128_v24  ;;  %v131_v31 = vld [vmem:[%s544_s3 + $0x48] sm:$0xff]  ;;  %v34_v33 = vld [vmem:[%s542_s1 + $0x60] sm:$0xff] }
   0x9   :  { %341 = vmatpush3.bf16.msra.mxu0 %v338_v5  ;;  %371 = vmatprep.subr.bf16.mxu1 %v370_v17  ;;  %v354_v32 = vpack.c.bf16 %v33_v28, %v32_v27  ;;  %v35_v34 = vld [vmem:[%s542_s1 + $0x68] sm:$0xff]  ;;  %v382_v35 = vpack.c.bf16 %v131_v31, %v130_v30  ;;  %v132_v36 = vld [vmem:[%s544_s3 + $0x50] sm:$0xff]  ;;  %v133_v37 = vld [vmem:[%s544_s3 + $0x58] sm:$0xff] }
   0xa   :  { %343 = vmatprep.subr.bf16.mxu0 %v342_v8  ;;  %v358_v38 = vpack.c.bf16 %v35_v34, %v34_v33  ;;  %v36_v39 = vld [vmem:[%s542_s1 + $0x70] sm:$0xff]  ;;  %v37_v40 = vld [vmem:[%s542_s1 + $0x78] sm:$0xff]  ;;  %v386_v41 = vpack.c.bf16 %v133_v37, %v132_v36  ;;  %v134_v42 = vld [vmem:[%s544_s3 + $0x60] sm:$0xff] }
   0xb   :  { %v135_v43 = vld [vmem:[%s544_s3 + $0x68] sm:$0xff]  ;;  %v362_v44 = vpack.c.bf16 %v37_v40, %v36_v39  ;;  %v136_v47 = vld [vmem:[%s544_s3 + $0x70] sm:$0xff]  ;;  %v137_v48 = vld [vmem:[%s544_s3 + $0x78] sm:$0xff] }
   0xc   :  { %373 = vmatpush3.bf16.msra.mxu1 %v370_v17  ;;  %v390_v45 = vpack.c.bf16 %v135_v43, %v134_v42  ;;  %v21_v46 = vld [vmem:[%s543_s0 + $0x8] sm:$0xff]  ;;  %v394_v49 = vpack.c.bf16 %v137_v48, %v136_v47  ;;  %v226_v50 = vld [vmem:[%s545_s2] ss:$0 sm:$0xff] }
   0xd   :  { %345 = vmatpush3.bf16.msra.mxu0 %v342_v8  ;;  %375 = vmatprep.subr.bf16.mxu1 %v374_v23  ;;  %v227_v57 = vld [vmem:[%s546_s4] ss:$0 sm:$0xff] }
   0xe   :  { %347 = vmatprep.subr.bf16.mxu0 %v346_v20 }
  0x10   :  { %377 = vmatpush3.bf16.msra.mxu1 %v374_v23 }
  0x11   :  { %349 = vmatpush3.bf16.msra.mxu0 %v346_v20  ;;  %379 = vmatprep.subr.bf16.mxu1 %v378_v29 }
  0x12   :  { %351 = vmatprep.subr.bf16.mxu0 %v350_v26 }
  0x14   :  { %381 = vmatpush3.bf16.msra.mxu1 %v378_v29 }
  0x15   :  { %353 = vmatpush3.bf16.msra.mxu0 %v350_v26  ;;  %383 = vmatprep.subr.bf16.mxu1 %v382_v35 }
  0x16   :  { %355 = vmatprep.subr.bf16.mxu0 %v354_v32 }
  0x18   :  { %385 = vmatpush3.bf16.msra.mxu1 %v382_v35 }
  0x19   :  { %357 = vmatpush3.bf16.msra.mxu0 %v354_v32  ;;  %387 = vmatprep.subr.bf16.mxu1 %v386_v41 }
  0x1a   :  { %359 = vmatprep.subr.bf16.mxu0 %v358_v38 }
  0x1c   :  { %389 = vmatpush3.bf16.msra.mxu1 %v386_v41 }
  0x1d   :  { %361 = vmatpush3.bf16.msra.mxu0 %v358_v38  ;;  %391 = vmatprep.subr.bf16.mxu1 %v390_v45 }
  0x1e   :  { %363 = vmatprep.subr.bf16.mxu0 %v362_v44 }
  0x20   :  { %393 = vmatpush3.bf16.msra.mxu1 %v390_v45 }
  0x21   :  { %365 = vmatpush3.bf16.msra.mxu0 %v362_v44  ;;  %395 = vmatprep.subr.bf16.mxu1 %v394_v49 }
  0x24   :  { %297 = vmatmul.mubr.f32.vlgmr.msra.gmra.mrb[0].mxu0 %v21_v46  ;;  %397 = vmatpush3.bf16.msra.mxu1 %v394_v49 }
  0xf7   :  { %v298_v51 = vpop.f32.mrb[0].mxu0 }
  0xf8   :  { %v117_v52 = vadd.f32 %v298_v51, %v226_v50  ;;  %v111_v53 = vpop.f32.mrb[1].mxu0 }
  0xf9   :  { %v112_v54 = vadd.f32 %v226_v50, %v111_v53 }
  0xfa   :  { %v121_v56 = vmax.f32 %v117_v52, 0.0 }
  0xfb   :  { %v120_v55 = vmax.f32 %v112_v54, 0.0 }
  0xfd   :  { %331 = vmatprep.mubr.f32.mxu1 %v120_v55 }
  0xfe   :  { %332 = vmatmul.mubr.f32.vlgmr.msra.gmra.mrb[0].mxu1 %v121_v56 }
 0x1d1   :  { %v333_v58 = vpop.f32.mrb[0].mxu1 }
 0x1d2   :  { %v217_v59 = vadd.f32 %v333_v58, %v227_v57  ;;  %v211_v60 = vpop.f32.mrb[1].mxu1 }
 0x1d3   :  { %v212_v61 = vadd.f32 %v227_v57, %v211_v60 }
 0x1d4   :  { %221 = vst [vmem:[%s547_s5 + $0x8] sm:$0xff] %v217_v59 }
 0x1d5   :  { %220 = vst [vmem:[%s547_s5] sm:$0xff] %v212_v61 }

</bundles_post_ra>
